<compile_context>
chip_gen: v7x
topology: tpu7x:2x2x1
jax: 0.10.0
libtpu: 0.0.40
codegen_flags: <defaults>
</compile_context>

<pallas_src>
import functools

import jax
import jax.numpy as jnp
import numpy as np
from jax import lax
from jax.experimental import pallas as pl
from jax.experimental.pallas import tpu as pltpu


# --------------------------------------------------------------------------------------
# Kernel
# --------------------------------------------------------------------------------------
def _resblock_kernel(x_ref, w1_ref, w2_ref, b1_ref, b2_ref, a_ref, out_ref,
                     *, rows_per_image):
    # x_ref          : (1, rows, L) f32 packed images, rows = Nb * R, L = P*W*C
    # w1_ref, w2_ref : (3, L, L)    band weights (up / mid / down), BN scale folded in
    # b1_ref, b2_ref : (1, L)       folded conv-bias + BN bias
    # a_ref          : (1,)         PReLU alpha (SMEM scalar)
    # out_ref        : (1, rows, L) f32
    rows, L = x_ref.shape[1], x_ref.shape[2]
    R = rows_per_image
    cdt = w1_ref.dtype                      # MXU compute dtype (bf16 by default)

    x = x_ref[0].astype(jnp.float32)        # (rows, L)
    alpha = a_ref[0]

    # Per-image boundary masks (hoisted: reused by both convs).
    row_id = lax.broadcasted_iota(jnp.int32, (rows, L), 0)
    is_top = (row_id % R) == 0              # first packed row of each image
    is_bot = (row_id % R) == (R - 1)        # last packed row of each image

    def conv3x3(v, w_ref, b_ref):
        # 3x3 SAME conv (+ folded BN scale) + bias as three accumulating MXU dots.
        acc = jnp.dot(v.astype(cdt), w_ref[1], preferred_element_type=jnp.float32)
        if R > 1:
            # roll goes to the XLU; the wrapped row (previous/next image or image
            # wrap-around) is zeroed, which implements the SAME zero padding.
            up = jnp.where(is_top, 0.0, pltpu.roll(v, 1, axis=0))          # v[r-1]
            dn = jnp.where(is_bot, 0.0, pltpu.roll(v, rows - 1, axis=0))   # v[r+1]
            acc += jnp.dot(up.astype(cdt), w_ref[0], preferred_element_type=jnp.float32)
            acc += jnp.dot(dn.astype(cdt), w_ref[2], preferred_element_type=jnp.float32)
        return acc + b_ref[...]

    # conv1 (+BN1 folded) -> PReLU
    y = conv3x3(x, w1_ref, b1_ref)
    y = jnp.where(y > 0, y, alpha * y)      # PReLU, single shared alpha
    # conv2 (+BN2 folded) -> residual add
    z = conv3x3(y, w2_ref, b2_ref)
    out_ref[0] = (x + z).astype(out_ref.dtype)


# --------------------------------------------------------------------------------------
# Host-side (numpy, one-time) parameter packing
# --------------------------------------------------------------------------------------
def _choose_pack(H, W, C):
    """Row-pack factor P (H % P == 0) so L = P*W*C is lane aligned.

    Preference: (1) L % 256 == 0 with per-image rows R = H/P a multiple of 8
    (fills the 256-wide v6e/v7x MXU, sublane-aligned rolls/stores);
    (2) L % 128 == 0 with R % 8 == 0; (3) L % 128 == 0.
    Smallest qualifying P is taken (band matrices scale as 3*L^2).
    """
    divs = [p for p in range(1, H + 1) if H % p == 0]
    prefs = (
        lambda p: (p * W * C) % 256 == 0 and (H // p) % 8 == 0,
        lambda p: (p * W * C) % 128 == 0 and (H // p) % 8 == 0,
        lambda p: (p * W * C) % 128 == 0,
    )
    for ok in prefs:
        for p in divs:
            if ok(p):
                return p
    raise NotImplementedError(
        f"No row-pack P with H % P == 0 and (P*W*C) % 128 == 0 for H,W,C={(H, W, C)}; "
        "pad W or C to a lane-alignable size before calling.")


def _choose_batch(N, R, target_rows=256):
    """Images per grid step: fill >= target_rows MXU rows, keep >= 2 grid steps
    (both v7x TensorCores) whenever N allows."""
    divs = [d for d in range(1, N + 1) if N % d == 0]
    cands = [d for d in divs if N // d >= 2] or divs
    for d in cands:
        if d * R >= target_rows:
            return d
    return cands[-1]


def _band_weights(w_hwio, P, W, C):
    """Fold a (3,3,Cin,Cout) HWIO 3x3 SAME conv into (3, L, L) band slices, L = P*W*C.

    Packed layout: X[n, r, p*W*C + w*C + c] = x[n, P*r + p, w, c].  Then
      conv(x)[r] = X[r-1] @ band[0] + X[r] @ band[1] + X[r+1] @ band[2]
    with out-of-image rows/columns contributing zero (SAME padding).
    Pure numpy; build once and cache across calls.
    """
    w = np.asarray(w_hwio, np.float32)
    L = P * W * C
    bands = np.zeros((3, L, L), np.float32)
    for p_out in range(P):
        for dh in (-1, 0, 1):
            q = p_out + dh
            band = 0 if q < 0 else (2 if q >= P else 1)
            p_in = q % P
            for w_out in range(W):
                for dw in (-1, 0, 1):
                    w_in = w_out + dw
                    if not 0 <= w_in < W:        # width zero-pad -> drop the tap
                        continue
                    r0 = p_in * W * C + w_in * C
                    c0 = p_out * W * C + w_out * C
                    bands[band, r0:r0 + C, c0:c0 + C] += w[dh + 1, dw + 1]
    return bands


def build_resblock_params(w1_hwio, w2_hwio, scale1, bias1, scale2, bias2, alpha,
                          *, H, W, C, compute_dtype=jnp.bfloat16):
    """One-time host-side packing (numpy).  Cache and reuse across residual_block calls.

    scale*/bias* are the folded inference-mode BatchNorm (+ conv bias) per-channel
    affine; the scale is folded into the band-weight columns here so the kernel only
    does dot(...) + bias.
    """
    P = _choose_pack(H, W, C)
    R, L = H // P, P * W * C
    s1 = np.tile(np.asarray(scale1, np.float32), P * W)        # per-column scale, (L,)
    s2 = np.tile(np.asarray(scale2, np.float32), P * W)
    w1b = _band_weights(w1_hwio, P, W, C) * s1[None, None, :]
    w2b = _band_weights(w2_hwio, P, W, C) * s2[None, None, :]
    return dict(
        P=P, R=R, L=L, H=H, W=W, C=C,
        w1b=jnp.asarray(w1b, dtype=compute_dtype),
        w2b=jnp.asarray(w2b, dtype=compute_dtype),
        b1=jnp.asarray(np.tile(np.asarray(bias1, np.float32), P * W).reshape(1, L)),
        b2=jnp.asarray(np.tile(np.asarray(bias2, np.float32), P * W).reshape(1, L)),
        alpha=jnp.full((1,), float(alpha), jnp.float32),
    )


# --------------------------------------------------------------------------------------
# Wrapper
# --------------------------------------------------------------------------------------
def residual_block(x_nhwc, params):
    """x_nhwc: (N, H, W, C) float32; params from build_resblock_params."""
    N, H, W, C = x_nhwc.shape
    P, R, L = params["P"], params["R"], params["L"]
    if (H, W, C) != (params["H"], params["W"], params["C"]):
        raise ValueError("params were built for a different (H, W, C)")

    Nb = _choose_batch(N, R)                 # images per grid step
    G = N // Nb                              # grid length (>=2 when N>=2 -> both v7x TCs)
    rows = Nb * R                            # matmul LHS rows per step
    x_p = x_nhwc.astype(jnp.float32).reshape(G, rows, L)   # contiguous -> free reshape

    # Explicit VMEM budget (double-buffered residents + f32 temporaries + headroom),
    # capped at v7x physical VMEM.
    w_bytes = 2 * 3 * L * L * params["w1b"].dtype.itemsize
    act_bytes = 2 * rows * L * 4
    vmem_limit = 2 * (w_bytes + act_bytes) + 16 * rows * L * 4 + (1 << 20)
    vmem_limit = int(min(64 * 1024 * 1024, max(4 * 1024 * 1024, vmem_limit)))

    grid_spec = pltpu.PrefetchScalarGridSpec(
        num_scalar_prefetch=0,
        grid=(G,),
        in_specs=[
            pl.BlockSpec((1, rows, L), lambda g: (g, 0, 0)),        # packed images
            # Constant index_maps keep the band weights / biases resident across grid
            # steps (no re-DMA).  For production-sized L, add pipeline_mode=
            # pl.Buffered(1) here to drop their second VMEM buffer (v7x: 64 MiB VMEM).
            pl.BlockSpec((3, L, L), lambda g: (0, 0, 0)),           # band weights 1
            pl.BlockSpec((3, L, L), lambda g: (0, 0, 0)),           # band weights 2
            pl.BlockSpec((1, L), lambda g: (0, 0)),                 # bias 1
            pl.BlockSpec((1, L), lambda g: (0, 0)),                 # bias 2
            pl.BlockSpec(memory_space=pltpu.MemorySpace.SMEM),      # PReLU alpha
        ],
        out_specs=pl.BlockSpec((1, rows, L), lambda g: (g, 0, 0)),
    )

    out = pl.pallas_call(
        functools.partial(_resblock_kernel, rows_per_image=R),
        out_shape=jax.ShapeDtypeStruct((G, rows, L), jnp.float32),
        grid_spec=grid_spec,
        compiler_params=pltpu.CompilerParams(
            dimension_semantics=("parallel",),
            vmem_limit_bytes=vmem_limit),
    )(x_p, params["w1b"], params["w2b"], params["b1"], params["b2"], params["alpha"])

    return out.reshape(N, H, W, C)


# --------------------------------------------------------------------------------------
# Reference (pure JAX, f32, HIGHEST precision) and demo
# --------------------------------------------------------------------------------------
def _conv_same_nhwc(x, w_hwio):
    return lax.conv_general_dilated(
        x, w_hwio, window_strides=(1, 1), padding="SAME",
        dimension_numbers=("NHWC", "HWIO", "NHWC"),
        precision=lax.Precision.HIGHEST)


def _reference(x, w1, cb1, g1, be1, m1, v1, alpha, w2, cb2, g2, be2, m2, v2, eps):
    y = _conv_same_nhwc(x, w1) + cb1
    y = (y - m1) / jnp.sqrt(v1 + eps) * g1 + be1
    y = jnp.where(y > 0, y, alpha * y)
    z = _conv_same_nhwc(y, w2) + cb2
    z = (z - m2) / jnp.sqrt(v2 + eps) * g2 + be2
    return x + z


if __name__ == "__main__":
    # Small shapes consistent with the module: batch=2, channels=4, spatial=16.
    N, C, H, W = 2, 4, 16, 16
    eps = 0.8  # nn.BatchNorm2d(in_features, 0.8)

    key = jax.random.PRNGKey(0)
    ks = jax.random.split(key, 13)

    # PyTorch conv weight layout is (out, in, kh, kw); convert to HWIO (kh, kw, in, out).
    w1_oihw = jax.random.normal(ks[0], (C, C, 3, 3), jnp.float32) * 0.1
    w2_oihw = jax.random.normal(ks[1], (C, C, 3, 3), jnp.float32) * 0.1
    w1 = jnp.transpose(w1_oihw, (2, 3, 1, 0))
    w2 = jnp.transpose(w2_oihw, (2, 3, 1, 0))
    cb1 = jax.random.normal(ks[2], (C,), jnp.float32) * 0.1
    cb2 = jax.random.normal(ks[3], (C,), jnp.float32) * 0.1

    g1 = 1.0 + 0.1 * jax.random.normal(ks[4], (C,), jnp.float32)
    be1 = 0.1 * jax.random.normal(ks[5], (C,), jnp.float32)
    m1 = 0.1 * jax.random.normal(ks[6], (C,), jnp.float32)
    v1 = jnp.abs(jax.random.normal(ks[7], (C,), jnp.float32)) + 0.5

    g2 = 1.0 + 0.1 * jax.random.normal(ks[8], (C,), jnp.float32)
    be2 = 0.1 * jax.random.normal(ks[9], (C,), jnp.float32)
    m2 = 0.1 * jax.random.normal(ks[10], (C,), jnp.float32)
    v2 = jnp.abs(jax.random.normal(ks[11], (C,), jnp.float32)) + 0.5

    alpha = jnp.float32(0.25)  # nn.PReLU default init

    # Fold conv bias + eval-mode BN into per-channel scale / bias.
    scale1 = g1 / jnp.sqrt(v1 + eps)
    bias1 = be1 + (cb1 - m1) * scale1
    scale2 = g2 / jnp.sqrt(v2 + eps)
    bias2 = be2 + (cb2 - m2) * scale2

    # One-time host-side parameter packing (cache this across calls in real use).
    params = build_resblock_params(w1, w2, scale1, bias1, scale2, bias2, alpha,
                                   H=H, W=W, C=C, compute_dtype=jnp.bfloat16)

    # Input (PyTorch is NCHW; kernel uses NHWC).
    x_nchw = jax.random.normal(ks[12], (N, C, H, W), jnp.float32)
    x_nhwc = jnp.transpose(x_nchw, (0, 2, 3, 1))

    out = residual_block(x_nhwc, params)
    out = jax.block_until_ready(out)

    ref = _reference(x_nhwc, w1, cb1, g1, be1, m1, v1, alpha,
                     w2, cb2, g2, be2, m2, v2, eps)
    # Tolerance reflects the deliberate bf16-in / f32-accumulate MXU operands
    # (weights + matmul LHS in bf16; accumulation, bias, PReLU, residual in f32).
    np.testing.assert_allclose(np.asarray(out), np.asarray(ref),
                               rtol=2e-2, atol=2e-2)

    print("KERNEL_OK")
</pallas_src>

<mosaic_0001>
module attributes {stable_mosaic.version = 11 : i64} {
  func.func @_resblock_kernel(%arg0: i32, %arg1: memref<1x8x128xf32, #tpu.memory_space<vmem>>, %arg2: memref<3x128x128xbf16, #tpu.memory_space<vmem>>, %arg3: memref<3x128x128xbf16, #tpu.memory_space<vmem>>, %arg4: memref<1x128xf32, #tpu.memory_space<vmem>>, %arg5: memref<1x128xf32, #tpu.memory_space<vmem>>, %arg6: memref<1xf32, #tpu.memory_space<smem>>, %arg7: memref<1x8x128xf32, #tpu.memory_space<vmem>>) attributes {dimension_semantics = [#tpu.dimension_semantics<parallel>], iteration_bounds = array<i64: 2>, scalar_prefetch = 0 : i64, scratch_operands = 0 : i64, tpu.core_type = #tpu.core_type<tc>, window_params = [{transform_indices = @transform_0, window_bounds = array<i64: 1, 8, 128>}, {pipeline_mode = #tpu.pipeline_mode<synchronous>, transform_indices = @transform_1, window_bounds = array<i64: 3, 128, 128>}, {pipeline_mode = #tpu.pipeline_mode<synchronous>, transform_indices = @transform_2, window_bounds = array<i64: 3, 128, 128>}, {pipeline_mode = #tpu.pipeline_mode<synchronous>, transform_indices = @transform_3, window_bounds = array<i64: 1, 128>}, {pipeline_mode = #tpu.pipeline_mode<synchronous>, transform_indices = @transform_4, window_bounds = array<i64: 1, 128>}, {transform_indices = @transform_5, window_bounds = array<i64: 1>}, {transform_indices = @transform_6, window_bounds = array<i64: 1, 8, 128>}]} {
    %c0 = arith.constant 0 : index
    %c0_0 = arith.constant 0 : index
    %c0_1 = arith.constant 0 : index
    %0 = vector.load %arg1[%c0, %c0_0, %c0_1] : memref<1x8x128xf32, #tpu.memory_space<vmem>>, vector<1x8x128xf32>
    %1 = vector.shape_cast %0 : vector<1x8x128xf32> to vector<8x128xf32>
    %c0_2 = arith.constant 0 : index
    %2 = memref.load %arg6[%c0_2] : memref<1xf32, #tpu.memory_space<smem>>
    %3 = tpu.iota {dimensions = array<i32: 0>} : vector<8x128xi32>
    %c8_i32 = arith.constant 8 : i32
    %c0_i32 = arith.constant 0 : i32
    %4 = arith.cmpi eq, %c8_i32, %c0_i32 : i32
    %c1_i32 = arith.constant 1 : i32
    %5 = arith.select %4, %c1_i32, %c8_i32 : i32
    %6 = vector.broadcast %5 : i32 to vector<8x128xi32>
    %7 = arith.remsi %3, %6 : vector<8x128xi32>
    %c0_i32_3 = arith.constant 0 : i32
    %8 = vector.broadcast %c0_i32_3 : i32 to vector<8x128xi32>
    %9 = arith.cmpi ne, %7, %8 : vector<8x128xi32>
    %c0_i32_4 = arith.constant 0 : i32
    %10 = vector.broadcast %c0_i32_4 : i32 to vector<8x128xi32>
    %11 = arith.cmpi slt, %7, %10 : vector<8x128xi32>
    %c0_i32_5 = arith.constant 0 : i32
    %12 = arith.cmpi slt, %5, %c0_i32_5 : i32
    %13 = vector.broadcast %12 : i1 to vector<8x128xi1>
    %14 = vector.broadcast %13 : vector<8x128xi1> to vector<8x128xi1>
    %15 = arith.xori %11, %14 : vector<8x128xi1>
    %16 = arith.andi %15, %9 : vector<8x128xi1>
    %17 = vector.broadcast %5 : i32 to vector<8x128xi32>
    %18 = arith.addi %7, %17 : vector<8x128xi32>
    %19 = arith.select %16, %18, %7 : vector<8x128xi1>, vector<8x128xi32>
    %c0_i32_6 = arith.constant 0 : i32
    %20 = vector.broadcast %c0_i32_6 : i32 to vector<8x128xi32>
    %21 = arith.cmpi eq, %19, %20 : vector<8x128xi32>
    %c8_i32_7 = arith.constant 8 : i32
    %c0_i32_8 = arith.constant 0 : i32
    %22 = arith.cmpi eq, %c8_i32_7, %c0_i32_8 : i32
    %c1_i32_9 = arith.constant 1 : i32
    %23 = arith.select %22, %c1_i32_9, %c8_i32_7 : i32
    %24 = vector.broadcast %23 : i32 to vector<8x128xi32>
    %25 = arith.remsi %3, %24 : vector<8x128xi32>
    %c0_i32_10 = arith.constant 0 : i32
    %26 = vector.broadcast %c0_i32_10 : i32 to vector<8x128xi32>
    %27 = arith.cmpi ne, %25, %26 : vector<8x128xi32>
    %c0_i32_11 = arith.constant 0 : i32
    %28 = vector.broadcast %c0_i32_11 : i32 to vector<8x128xi32>
    %29 = arith.cmpi slt, %25, %28 : vector<8x128xi32>
    %c0_i32_12 = arith.constant 0 : i32
    %30 = arith.cmpi slt, %23, %c0_i32_12 : i32
    %31 = vector.broadcast %30 : i1 to vector<8x128xi1>
    %32 = vector.broadcast %31 : vector<8x128xi1> to vector<8x128xi1>
    %33 = arith.xori %29, %32 : vector<8x128xi1>
    %34 = arith.andi %33, %27 : vector<8x128xi1>
    %35 = vector.broadcast %23 : i32 to vector<8x128xi32>
    %36 = arith.addi %25, %35 : vector<8x128xi32>
    %37 = arith.select %34, %36, %25 : vector<8x128xi1>, vector<8x128xi32>
    %c7_i32 = arith.constant 7 : i32
    %38 = vector.broadcast %c7_i32 : i32 to vector<8x128xi32>
    %39 = arith.cmpi eq, %37, %38 : vector<8x128xi32>
    %40 = arith.truncf %1 : vector<8x128xf32> to vector<8x128xbf16>
    %c1 = arith.constant 1 : index
    %c0_13 = arith.constant 0 : index
    %c0_14 = arith.constant 0 : index
    %41 = vector.load %arg2[%c1, %c0_13, %c0_14] : memref<3x128x128xbf16, #tpu.memory_space<vmem>>, vector<1x128x128xbf16>
    %42 = vector.shape_cast %41 : vector<1x128x128xbf16> to vector<128x128xbf16>
    %cst = arith.constant dense<0.000000e+00> : vector<8x128xf32>
    %43 = tpu.matmul %40, %42, %cst {dimension_numbers = #tpu.dot_dimension_numbers<[1], [0], [0], [1], [0, 0, 1, 1], [], []>} : vector<8x128xbf16>, vector<128x128xbf16>, vector<8x128xf32> -> vector<8x128xf32>
    %c1_i32_15 = arith.constant 1 : i32
    %44 = tpu.dynamic_rotate %1 by %c1_i32_15 dim 0 : vector<8x128xf32>, i32 -> vector<8x128xf32>
    %cst_16 = arith.constant 0.000000e+00 : f32
    %45 = vector.broadcast %cst_16 : f32 to vector<8x128xf32>
    %46 = arith.select %21, %45, %44 : vector<8x128xi1>, vector<8x128xf32>
    %c7_i32_17 = arith.constant 7 : i32
    %47 = tpu.dynamic_rotate %1 by %c7_i32_17 dim 0 : vector<8x128xf32>, i32 -> vector<8x128xf32>
    %cst_18 = arith.constant 0.000000e+00 : f32
    %48 = vector.broadcast %cst_18 : f32 to vector<8x128xf32>
    %49 = arith.select %39, %48, %47 : vector<8x128xi1>, vector<8x128xf32>
    %50 = arith.truncf %46 : vector<8x128xf32> to vector<8x128xbf16>
    %c0_19 = arith.constant 0 : index
    %c0_20 = arith.constant 0 : index
    %c0_21 = arith.constant 0 : index
    %51 = vector.load %arg2[%c0_19, %c0_20, %c0_21] : memref<3x128x128xbf16, #tpu.memory_space<vmem>>, vector<1x128x128xbf16>
    %52 = vector.shape_cast %51 : vector<1x128x128xbf16> to vector<128x128xbf16>
    %cst_22 = arith.constant dense<0.000000e+00> : vector<8x128xf32>
    %53 = tpu.matmul %50, %52, %cst_22 {dimension_numbers = #tpu.dot_dimension_numbers<[1], [0], [0], [1], [0, 0, 1, 1], [], []>} : vector<8x128xbf16>, vector<128x128xbf16>, vector<8x128xf32> -> vector<8x128xf32>
    %54 = arith.addf %43, %53 : vector<8x128xf32>
    %55 = arith.truncf %49 : vector<8x128xf32> to vector<8x128xbf16>
    %c2 = arith.constant 2 : index
    %c0_23 = arith.constant 0 : index
    %c0_24 = arith.constant 0 : index
    %56 = vector.load %arg2[%c2, %c0_23, %c0_24] : memref<3x128x128xbf16, #tpu.memory_space<vmem>>, vector<1x128x128xbf16>
    %57 = vector.shape_cast %56 : vector<1x128x128xbf16> to vector<128x128xbf16>
    %cst_25 = arith.constant dense<0.000000e+00> : vector<8x128xf32>
    %58 = tpu.matmul %55, %57, %cst_25 {dimension_numbers = #tpu.dot_dimension_numbers<[1], [0], [0], [1], [0, 0, 1, 1], [], []>} : vector<8x128xbf16>, vector<128x128xbf16>, vector<8x128xf32> -> vector<8x128xf32>
    %59 = arith.addf %54, %58 : vector<8x128xf32>
    %c0_26 = arith.constant 0 : index
    %c0_27 = arith.constant 0 : index
    %60 = vector.load %arg4[%c0_26, %c0_27] : memref<1x128xf32, #tpu.memory_space<vmem>>, vector<1x128xf32>
    %61 = vector.broadcast %60 : vector<1x128xf32> to vector<8x128xf32>
    %62 = arith.addf %59, %61 : vector<8x128xf32>
    %cst_28 = arith.constant 0.000000e+00 : f32
    %63 = vector.broadcast %cst_28 : f32 to vector<8x128xf32>
    %64 = arith.cmpf ogt, %62, %63 : vector<8x128xf32>
    %65 = vector.broadcast %2 : f32 to vector<8x128xf32>
    %66 = arith.mulf %65, %62 : vector<8x128xf32>
    %67 = arith.select %64, %62, %66 : vector<8x128xi1>, vector<8x128xf32>
    %68 = arith.truncf %67 : vector<8x128xf32> to vector<8x128xbf16>
    %c1_29 = arith.constant 1 : index
    %c0_30 = arith.constant 0 : index
    %c0_31 = arith.constant 0 : index
    %69 = vector.load %arg3[%c1_29, %c0_30, %c0_31] : memref<3x128x128xbf16, #tpu.memory_space<vmem>>, vector<1x128x128xbf16>
    %70 = vector.shape_cast %69 : vector<1x128x128xbf16> to vector<128x128xbf16>
    %cst_32 = arith.constant dense<0.000000e+00> : vector<8x128xf32>
    %71 = tpu.matmul %68, %70, %cst_32 {dimension_numbers = #tpu.dot_dimension_numbers<[1], [0], [0], [1], [0, 0, 1, 1], [], []>} : vector<8x128xbf16>, vector<128x128xbf16>, vector<8x128xf32> -> vector<8x128xf32>
    %c1_i32_33 = arith.constant 1 : i32
    %72 = tpu.dynamic_rotate %67 by %c1_i32_33 dim 0 : vector<8x128xf32>, i32 -> vector<8x128xf32>
    %cst_34 = arith.constant 0.000000e+00 : f32
    %73 = vector.broadcast %cst_34 : f32 to vector<8x128xf32>
    %74 = arith.select %21, %73, %72 : vector<8x128xi1>, vector<8x128xf32>
    %c7_i32_35 = arith.constant 7 : i32
    %75 = tpu.dynamic_rotate %67 by %c7_i32_35 dim 0 : vector<8x128xf32>, i32 -> vector<8x128xf32>
    %cst_36 = arith.constant 0.000000e+00 : f32
    %76 = vector.broadcast %cst_36 : f32 to vector<8x128xf32>
    %77 = arith.select %39, %76, %75 : vector<8x128xi1>, vector<8x128xf32>
    %78 = arith.truncf %74 : vector<8x128xf32> to vector<8x128xbf16>
    %c0_37 = arith.constant 0 : index
    %c0_38 = arith.constant 0 : index
    %c0_39 = arith.constant 0 : index
    %79 = vector.load %arg3[%c0_37, %c0_38, %c0_39] : memref<3x128x128xbf16, #tpu.memory_space<vmem>>, vector<1x128x128xbf16>
    %80 = vector.shape_cast %79 : vector<1x128x128xbf16> to vector<128x128xbf16>
    %cst_40 = arith.constant dense<0.000000e+00> : vector<8x128xf32>
    %81 = tpu.matmul %78, %80, %cst_40 {dimension_numbers = #tpu.dot_dimension_numbers<[1], [0], [0], [1], [0, 0, 1, 1], [], []>} : vector<8x128xbf16>, vector<128x128xbf16>, vector<8x128xf32> -> vector<8x128xf32>
    %82 = arith.addf %71, %81 : vector<8x128xf32>
    %83 = arith.truncf %77 : vector<8x128xf32> to vector<8x128xbf16>
    %c2_41 = arith.constant 2 : index
    %c0_42 = arith.constant 0 : index
    %c0_43 = arith.constant 0 : index
    %84 = vector.load %arg3[%c2_41, %c0_42, %c0_43] : memref<3x128x128xbf16, #tpu.memory_space<vmem>>, vector<1x128x128xbf16>
    %85 = vector.shape_cast %84 : vector<1x128x128xbf16> to vector<128x128xbf16>
    %cst_44 = arith.constant dense<0.000000e+00> : vector<8x128xf32>
    %86 = tpu.matmul %83, %85, %cst_44 {dimension_numbers = #tpu.dot_dimension_numbers<[1], [0], [0], [1], [0, 0, 1, 1], [], []>} : vector<8x128xbf16>, vector<128x128xbf16>, vector<8x128xf32> -> vector<8x128xf32>
    %87 = arith.addf %82, %86 : vector<8x128xf32>
    %c0_45 = arith.constant 0 : index
    %c0_46 = arith.constant 0 : index
    %88 = vector.load %arg5[%c0_45, %c0_46] : memref<1x128xf32, #tpu.memory_space<vmem>>, vector<1x128xf32>
    %89 = vector.broadcast %88 : vector<1x128xf32> to vector<8x128xf32>
    %90 = arith.addf %87, %89 : vector<8x128xf32>
    %91 = arith.addf %1, %90 : vector<8x128xf32>
    %c0_47 = arith.constant 0 : index
    %c0_48 = arith.constant 0 : index
    %c0_49 = arith.constant 0 : index
    %92 = vector.load %arg7[%c0_47, %c0_48, %c0_49] : memref<1x8x128xf32, #tpu.memory_space<vmem>>, vector<1x8x128xf32>
    %93 = vector.shape_cast %92 : vector<1x8x128xf32> to vector<8x128xf32>
    %94 = vector.shape_cast %91 : vector<8x128xf32> to vector<1x8x128xf32>
    tpu.vector_store %arg7[%c0_47, %c0_48, %c0_49], %94 {strides = array<i32>} : memref<1x8x128xf32, #tpu.memory_space<vmem>>, vector<1x8x128xf32>,
    return
  }
  func.func @transform_0(%arg0: i32) -> (i32, i32, i32) {
    %c0_i32 = arith.constant 0 : i32
    %c0_i32_0 = arith.constant 0 : i32
    %c0_i32_1 = arith.constant 0 : i32
    return %arg0, %c0_i32, %c0_i32_0 : i32, i32, i32
  }
  func.func @transform_1(%arg0: i32) -> (i32, i32, i32) {
    %c0_i32 = arith.constant 0 : i32
    %c0_i32_0 = arith.constant 0 : i32
    %c0_i32_1 = arith.constant 0 : i32
    %c0_i32_2 = arith.constant 0 : i32
    return %c0_i32, %c0_i32_0, %c0_i32_1 : i32, i32, i32
  }
  func.func @transform_2(%arg0: i32) -> (i32, i32, i32) {
    %c0_i32 = arith.constant 0 : i32
    %c0_i32_0 = arith.constant 0 : i32
    %c0_i32_1 = arith.constant 0 : i32
    %c0_i32_2 = arith.constant 0 : i32
    return %c0_i32, %c0_i32_0, %c0_i32_1 : i32, i32, i32
  }
  func.func @transform_3(%arg0: i32) -> (i32, i32) {
    %c0_i32 = arith.constant 0 : i32
    %c0_i32_0 = arith.constant 0 : i32
    %c0_i32_1 = arith.constant 0 : i32
    return %c0_i32, %c0_i32_0 : i32, i32
  }
  func.func @transform_4(%arg0: i32) -> (i32, i32) {
    %c0_i32 = arith.constant 0 : i32
    %c0_i32_0 = arith.constant 0 : i32
    %c0_i32_1 = arith.constant 0 : i32
    return %c0_i32, %c0_i32_0 : i32, i32
  }
  func.func @transform_5(%arg0: i32) -> i32 {
    %c0_i32 = arith.constant 0 : i32
    %c0_i32_0 = arith.constant 0 : i32
    return %c0_i32 : i32
  }
  func.func @transform_6(%arg0: i32) -> (i32, i32, i32) {
    %c0_i32 = arith.constant 0 : i32
    %c0_i32_0 = arith.constant 0 : i32
    %c0_i32_1 = arith.constant 0 : i32
    return %arg0, %c0_i32, %c0_i32_0 : i32, i32, i32
  }
}

</mosaic_0001>

<bundles_post_ra>
// kernel: tpu_custom_call.1
= control target key start
LH: loop header
LB: loop body
LE: loop exit
PB: predicated region body
PF: predicated region fallthrough
CT: control target
= control target key end

     0   :  { %s2016_s0 = inlined_call_operand.hbm [shape: f32[2,8,128], index: 0, kind: input, shape index: {}]   ;;  %s2017_s1 = inlined_call_operand.hbm [shape: bf16[3,128,128], index: 1, kind: input, shape index: {}]   ;;  %s2018_s2 = inlined_call_operand.hbm [shape: bf16[3,128,128], index: 2, kind: input, shape index: {}]   ;;  %s2019_s3 = inlined_call_operand.vmem [shape: f32[1,128], index: 3, kind: input, shape index: {}]   ;;  %s2020_s4 = inlined_call_operand.vmem [shape: f32[1,128], index: 4, kind: input, shape index: {}]   ;;  %s2021_s5 = inlined_call_operand.<no memory space> [shape: f32[1], index: 5, kind: input, shape index: {}]   ;;  %s2022_s6 = inlined_call_operand.hbm [shape: f32[2,8,128], index: 6, kind: output, shape index: {}]  }
   0x1   :  { %11 = sst [smem:[#allocation2]] %s2021_s5 }
   0x2   :  { %12 = vsyncpa [#allocation4], 0 }
   0x3   :  { %14 = vsyncpa [#allocation4 + $0x1], 0 }
   0x4   :  { %15 = vsyncpa [#allocation7], 0 }
   0x5   :  { %16 = vsyncpa [#allocation5], 0 }
   0x6   :  { %18 = vsyncpa [#allocation5 + $0x1], 0  ;;  %s1670_s23 = smov 0   ;;  %s1672_s24 = smov 0  }
   0x7   :  { %s1674_s25 = smov 0   ;;  %s1676_s26 = smov 0  }
   0x8 LB: > { %s1691_s5 = sadd.s32 4294967295, %s1622_s26   ;;  %s1085_s27 = sadd.s32 4294967294, %s1622_s26   ;;  %s1622_s26 = sphi %s1676_s26, %s2046_s26   ;;  %s1618_s25 = sphi %s1674_s25, %s2045_s25   ;;  %s1614_s24 = sphi %s1672_s24, %s2044_s24   ;;  %s1610_s23 = sphi %s1670_s23, %s2043_s23  }
   0x9   : > { %p44_p0 = scmp.ne.s32.totalorder %s1614_s24, %s1610_s23  ;;  %p2023_p1 = scmp.eq.s32.totalorder %s1691_s5, 0 }
   0xa   : > { %p179_p3 = scmp.eq.s32.totalorder %s1085_s27, 1  ;;  %p1086_p5 = scmp.ge.s32.totalorder %s1622_s26, 1 }
   0xb   : > { %p1700_p4 = por %p2023_p1, %p44_p0  ;;  %p186_p7 = scmp.lt.s32.totalorder %s1622_s26, 3 }
   0xc   : > { %p1705_p6 = por %p179_p3, %p44_p0  ;;  %s1624_s7 = smov [#allocation6]  }
   0xd   : > { %s2026_s28 = scalar_select %p1700_p4, 1, 0 }
   0xe   : > { %s2027_s29 = scalar_select %p1705_p6, 1, 0 }
   0xf   : > { %p1710_p8 = pnand %p1086_p5, %p186_p7  ;;  %s198_s8 = sshll.u32 %s1624_s7, 4  ;;  %s1714_s8 = int_to_ptr.vmem [resolvable:$true] %s198_s8 }
  0x10   : > { %s1625_s10 = smov [#allocation8]   ;;  %s1466_s14 = scalar_lea.hbm %s2017_s1, 3072 }
  0x11   : > { %p1359_p9 = pneg %p1710_p8  ;;  %s211_s11 = sshll.u32 %s1625_s10, 4  ;;  %s1725_s11 = int_to_ptr.vmem [resolvable:$true] %s211_s11 }
  0x12   : > { %p1467_p12 = scmp.ne.s32.totalorder %s2017_s1, %s1466_s14  ;;  %p1473_p5 = scmp.lt.u32.totalorder %s1466_s14, %s2017_s1 }
  0x13   : > { %p1721_p11 = pnand %p1359_p9, %p2023_p1 }
  0x15   : > { %p1468_p13 = pneg %p1721_p11 }
  0x17   : > { %p1469_p0 = pnand %p1468_p13, %p1467_p12 }
  0x19   : > { %p1470_p3 = pneg %p1469_p0 }
  0x1b   : > { %p1475_p7 = pnand %p1473_p5, %p1470_p3 }
  0x1d   : > { %1478 = shalt.err (!%p1475_p7)
}
  0x1e   : > { %s1479_s19 = scalar_lea.vmem %s1714_s8, 3072  ;;  %p1487_p2 = scmp.lt.s32.totalorder %s1714_s8, %s1714_s8 }
  0x1f   : > { %p1480_p9 = scmp.ne.s32.totalorder %s1714_s8, %s1479_s19  ;;  %p1488_p12 = scmp.lt.s32.totalorder %s1479_s19, %s1479_s19 }
  0x21   : > { %p1482_p10 = pnand %p1480_p9, %p1468_p13  ;;  %p1489_p0 = por %p1488_p12, %p1487_p2 }
  0x23   : > { %p1483_p1 = pneg %p1482_p10 }
  0x25   : > { %p1490_p6 = pnand %p1489_p0, %p1483_p1 }
  0x27   : > { %1493 = shalt.err (!%p1490_p6)
}
  0x28   : > { %s1626_s20 = smov 64   ;;  %s1627_s21 = smov 4  }
  0x29   : > { %1362 = dma.hbm_to_vmem [thread:$0]  (!%p1721_p11), %s2017_s1, 3072, %s1714_s8, [#allocation7], %s1626_s20, %s1626_s20, %s1627_s21  }
  0x2a   : > { %s1494_s12 = scalar_lea.hbm %s2018_s2, 3072 }
  0x2b   : > { %p1495_p2 = scmp.ne.s32.totalorder %s2018_s2, %s1494_s12  ;;  %p1501_p10 = scmp.lt.u32.totalorder %s1494_s12, %s2018_s2 }
  0x2d   : > { %p1497_p1 = pnand %p1495_p2, %p1468_p13 }
  0x2f   : > { %p1498_p6 = pneg %p1497_p1 }
  0x31   : > { %p1503_p3 = pnand %p1501_p10, %p1498_p6 }
  0x33   : > { %1506 = shalt.err (!%p1503_p3)
}
  0x34   : > { %s1507_s8 = scalar_lea.vmem %s1725_s11, 3072  ;;  %p1515_p12 = scmp.lt.s32.totalorder %s1725_s11, %s1725_s11 }
  0x35   : > { %p1508_p5 = scmp.ne.s32.totalorder %s1725_s11, %s1507_s8  ;;  %p1516_p0 = scmp.lt.s32.totalorder %s1507_s8, %s1507_s8 }
  0x37   : > { %p1510_p7 = pnand %p1508_p5, %p1468_p13  ;;  %p1517_p2 = por %p1516_p0, %p1515_p12 }
  0x39   : > { %p1511_p9 = pneg %p1510_p7 }
  0x3b   : > { %p1518_p1 = pnand %p1517_p2, %p1511_p9 }
  0x3d   : > { %1521 = shalt.err (!%p1518_p1)
}
  0x3e   : > { %1365 = dma.hbm_to_vmem [thread:$0]  (!%p1721_p11), %s2018_s2, 3072, %s1725_s11, [#allocation7], %s1626_s20, %s1626_s20, %s1627_s21  }
  0x3f   : > { %s1780_s19 = sadd.s32 1, %s1622_s26   ;;  %s31_s9 = sadd.s32 1, %s1618_s25 }
  0x40   : > { %s28_s22 = ssub.s32 %s1622_s26, %s1780_s19  ;;  %p38_p13 = scmp.ne.s32.totalorder %s1618_s25, %s1614_s24 }
  0x41   : > { %p29_p6 = scmp.eq.s32.totalorder %s28_s22, 0  ;;  %p39_p10 = scmp.eq.s32.totalorder %s1622_s26, 0 }
  0x42   : > { %p2030_p3 = scmp.eq.s32.totalorder %s1691_s5, 1  ;;  %p1376_p7 = scmp.lt.s32.totalorder %s1622_s26, 2 }
  0x43   : > { %s1796_s7 = scalar_select %p29_p6, %s1618_s25, %s31_s9  }
  0x44   : > { %p1790_p5 = por %p2030_p3, %p38_p13  ;;  %p40_p9 = por %p39_p10, %p38_p13 }
  0x45   : > { %s234_s10 = sand.u32 1, %s1618_s25   ;;  %s1091_s11 = sshll.u32 %s1622_s26, 7 }
  0x46   : > { %s2031_s27 = scalar_select %p1790_p5, 1, 0 }
  0x47   : > { %s1090_s12 = sshll.u32 %s234_s10, 3  ;;  %s1803_s13 = scalar_lea.hbm %s2016_s0, %s1091_s11 }
  0x48   : > { %s238_s14 = scalar_lea.vmem [#allocation3], %s1090_s12  ;;  %p1807_p11 = pnand %p1376_p7, %p40_p9 }
  0x49   : > { %s245_s15 = sshll.u32 %s238_s14, 4  ;;  %s235_s8 = scalar_lea.sflag [#allocation4], %s234_s10  ;;  %s1805_s15 = int_to_ptr.vmem [resolvable:$true] %s245_s15 }
  0x4a   : > { %s1522_s17 = scalar_lea.hbm %s1803_s13, 128  ;;  %p1524_p0 = pneg %p1807_p11 }
  0x4b   : > { %p1523_p12 = scmp.ne.s32.totalorder %s1803_s13, %s1522_s17  ;;  %s1527_s22 = scalar_lea.hbm %s2016_s0, 256 }
  0x4c   : > { %p1528_p13 = scmp.lt.u32.totalorder %s1803_s13, %s2016_s0  ;;  %p1529_p6 = scmp.lt.u32.totalorder %s1527_s22, %s1522_s17 }
  0x4d   : > { %p1525_p2 = pnand %p1524_p0, %p1523_p12  ;;  %p1531_p3 = scmp.lt.u32.totalorder %s1522_s17, %s1803_s13 }
  0x4e   : > { %p1530_p10 = por %p1529_p6, %p1528_p13 }
  0x4f   : > { %p1526_p1 = pneg %p1525_p2 }
  0x50   : > { %p1532_p7 = por %p1531_p3, %p1530_p10 }
  0x52   : > { %p1533_p9 = pnand %p1532_p7, %p1526_p1 }
  0x54   : > { %1536 = shalt.err (!%p1533_p9)
}
  0x55   : > { %s1537_s10 = scalar_lea.vmem %s1805_s15, 128  ;;  %s1628_s20 = smov [#allocation3]  }
  0x56   : > { %p1538_p12 = scmp.ne.s32.totalorder %s1805_s15, %s1537_s10  ;;  %s1542_s21 = sshll.u32 %s1628_s20, 4  ;;  %s1543_s21 = int_to_ptr.vmem [resolvable:$false] %s1542_s21 }
  0x57   : > { %s1544_s14 = scalar_lea.vmem %s1543_s21, 256  ;;  %p1545_p4 = scmp.lt.s32.totalorder %s1805_s15, %s1543_s21 }
  0x58   : > { %p1540_p2 = pnand %p1538_p12, %p1524_p0  ;;  %p1546_p13 = scmp.lt.s32.totalorder %s1544_s14, %s1537_s10 }
  0x5a   : > { %p1541_p5 = pneg %p1540_p2  ;;  %p1547_p6 = por %p1546_p13, %p1545_p4 }
  0x5c   : > { %p1548_p10 = pnand %p1547_p6, %p1541_p5 }
  0x5e   : > { %1551 = shalt.err (!%p1548_p10)
}
  0x5f   : > { %1369 = dma.hbm_to_vmem [thread:$0]  (!%p1807_p11), %s1803_s13, 128, %s1805_s15, %s235_s8  }
  0x60   : > { %254 = sbr.rel (%p1710_p8) target bundleno = 660 (0x294), region = 44  ;;  %s1839_s17 = sand.u32 (!%p1710_p8), 1, %s1614_s24  }
  0x61   : > { %s1093_s18 = sshll.u32 (!%p1710_p8), %s1839_s17, 3  ;;  %s257_s9 = scalar_lea.sflag (!%p1710_p8), [#allocation4], %s1839_s17 }
  0x62   : > { %s1845_s22 = scalar_lea.vmem (!%p1710_p8), [#allocation3], %s1093_s18  ;;  %p2033_p4 = scmp.ne.s32.totalorder (!%p1710_p8), %s2026_s28, 0 }
  0x67   : > { %1597 = dma.done.wait (%p2033_p4), %s257_s9, 128  }
  0x68   : > { %1599 = vsyncadd (%p2033_p4), %s257_s9, 4294967168  ;;  %p2034_p5 = scmp.eq.s32.totalorder %s1691_s5, 0 }
  0x6a   : > { %1601 = dma.done.wait (%p2034_p5), [#allocation7], 6144   ;;  %p2035_p8 = pmov %p2034_p5 }
  0x6b   : > { %v1629_v0 = vmov 0.0   ;;  %vm1630_vm0 = vmmov 0   ;;  %v1418_v1 = vld [vmem:[#allocation6] sm:$0xff]   ;;  %v1420_v3 = vld [vmem:[#allocation6 + $0x8] sm:$0xff]   ;;  %v1422_v5 = vld [vmem:[#allocation6 + $0x10] sm:$0xff]   ;;  %v300_v7 = vlaneseq  ;;  %s299_s28 = sld [smem:[#allocation2]] }
  0x6c   : > { %1603 = vsyncadd (%p2035_p8), [#allocation7], 4294961152  ;;  %1227 = vmatprep.subr.bf16.mxu0 %v1629_v0  ;;  %1247 = vmatprep.subr.bf16.mxu1 %v1629_v0  ;;  %v1419_v2 = vld [vmem:[#allocation6 + $0x40] sm:$0xff]   ;;  %v1421_v4 = vld [vmem:[#allocation6 + $0x48] sm:$0xff]   ;;  %s1168_s8 = sshll.u32 %s1691_s5, 7  ;;  %s296_s12 = scalar_lea.vmem [#allocation9], %s1093_s18 }
  0x6d   : > { %1243 = vmatprep.mubr.msk.bf16.mxu0 %vm1630_vm0, %v1629_v0  ;;  %1263 = vmatprep.mubr.msk.bf16.mxu1 %vm1630_vm0, %v1629_v0  ;;  %v1423_v6 = vld [vmem:[#allocation6 + $0x50] sm:$0xff]   ;;  %v1424_v8 = vld [vmem:[#allocation6 + $0x18] sm:$0xff]   ;;  %v1867_v10 = vshrl.u32 %v300_v7, 7  ;;  %v1426_v11 = vld [vmem:[#allocation6 + $0x20] sm:$0xff]   ;;  %s996_s11 = sshll.u32 %s296_s12, 4  ;;  %s1972_s21 = scalar_lea.hbm %s2022_s6, %s1168_s8  ;;  %s1974_s11 = int_to_ptr.vmem [resolvable:$true] %s996_s11 }
  0x6e   : > { %1228 = vmatpush3.bf16.msra.mxu0 %v1418_v1  ;;  %1248 = vmatpush3.bf16.msra.mxu1 %v1419_v2  ;;  %v1425_v9 = vld [vmem:[#allocation6 + $0x58] sm:$0xff]   ;;  %v1427_v12 = vld [vmem:[#allocation6 + $0x60] sm:$0xff]   ;;  %v1428_v14 = vld [vmem:[#allocation6 + $0x28] sm:$0xff]   ;;  %s983_s14 = scalar_lea.sflag [#allocation5], %s1839_s17  ;;  %s1552_s5 = scalar_lea.vmem %s1974_s11, 128 }
  0x6f   : > { %1229 = vmatprep.subr.bf16.mxu0 %v1629_v0  ;;  %1249 = vmatprep.subr.bf16.mxu1 %v1629_v0  ;;  %v306_v13 = vand.u32 7, %v1867_v10  ;;  %v1429_v15 = vld [vmem:[#allocation6 + $0x68] sm:$0xff]   ;;  %v1875_v16 = vld [vmem:[%s1845_s22] sm:$0xff]  ;;  %v1434_v23 = vld [vmem:[#allocation6 + $0x80] sm:$0xff]   ;;  %p1553_p11 = scmp.ne.s32.totalorder %s1974_s11, %s1552_s5  ;;  %p2040_p0 = scmp.ne.s32.totalorder %s2031_s27, 0 }
  0x70   : > { %v1430_v18 = vld [vmem:[#allocation6 + $0x30] sm:$0xff]   ;;  %v1432_v20 = vld [vmem:[#allocation6 + $0x38] sm:$0xff]   ;;  %v334_v21 = vrot.slane %v1875_v16, 7  ;;  %v316_v25 = vpack.c.bf16 %v1875_v16, %v1875_v16  ;;  %v1435_v26 = vld [vmem:[#allocation6 + $0x88] sm:$0xff]   ;;  %v336_v32 = vrot.slane %v1875_v16, 1  ;;  %s1631_s18 = smov [#allocation9]  }
  0x71   : > { %vm1877_vm1 = vcmp.ne.s32.totalorder %v306_v13, 0  ;;  %v1431_v19 = vld [vmem:[#allocation6 + $0x70] sm:$0xff]   ;;  %v1433_v22 = vld [vmem:[#allocation6 + $0x78] sm:$0xff]   ;;  %v1438_v29 = vld [vmem:[#allocation6 + $0xa0] sm:$0xff]   ;;  %vm1910_vm3 = vcmp.ne.s32.totalorder %v306_v13, 7  ;;  %v647_v2 = vstv %s299_s28  ;;  %p1554_p1 = pnand %p1553_p11, %p2040_p0  ;;  %s1556_s9 = sshll.u32 %s1631_s18, 4  ;;  %s1557_s9 = int_to_ptr.vmem [resolvable:$false] %s1556_s9 }
  0x72   : > { %1230 = vmatpush3.bf16.msra.mxu0 %v1420_v3  ;;  %1250 = vmatpush3.bf16.msra.mxu1 %v1421_v4  ;;  %vm1107_vm2 = vmpackc.low %vm1877_vm1, %vm1877_vm1  ;;  %v1108_v24 = vpack.c.bf16 %v334_v21, %v334_v21  ;;  %v1436_v27 = vld [vmem:[#allocation6 + $0x90] sm:$0xff]   ;;  %v1437_v28 = vld [vmem:[#allocation6 + $0x98] sm:$0xff]   ;;  %v1129_v35 = vpack.c.bf16 %v336_v32, %v336_v32  ;;  %s1558_s22 = scalar_lea.vmem %s1557_s9, 256  ;;  %p1559_p7 = scmp.lt.s32.totalorder %s1974_s11, %s1557_s9 }
  0x73   : > { %1231 = vmatprep.subr.bf16.mxu0 %v1629_v0  ;;  %1251 = vmatprep.subr.bf16.mxu1 %v1629_v0  ;;  %v1439_v30 = vld [vmem:[#allocation6 + $0xa8] sm:$0xff]   ;;  %v1440_v31 = vld [vmem:[#allocation6 + $0xb0] sm:$0xff]   ;;  %v1441_v33 = vld [vmem:[#allocation6 + $0xb8] sm:$0xff]   ;;  %p1555_p3 = pneg %p1554_p1  ;;  %p1560_p9 = scmp.lt.s32.totalorder %s1558_s22, %s1552_s5 }
  0x74   : > { %vm1128_vm4 = vmpackc.low %vm1910_vm3, %vm1910_vm3  ;;  %v1442_v36 = vld [vmem:[#allocation8 + $0x40] sm:$0xff]   ;;  %v1444_v38 = vld [vmem:[#allocation8 + $0x48] sm:$0xff]  }
  0x75   : > { %v1443_v37 = vld [vmem:[#allocation8] sm:$0xff]   ;;  %v1445_v39 = vld [vmem:[#allocation8 + $0x8] sm:$0xff]   ;;  %v1446_v40 = vld [vmem:[#allocation8 + $0x50] sm:$0xff]   ;;  %p1561_p12 = por %p1560_p9, %p1559_p7 }
  0x76   : > { %1232 = vmatpush3.bf16.msra.mxu0 %v1422_v5  ;;  %1252 = vmatpush3.bf16.msra.mxu1 %v1423_v6  ;;  %v1447_v41 = vld [vmem:[#allocation8 + $0x10] sm:$0xff]   ;;  %v1448_v42 = vld [vmem:[#allocation8 + $0x58] sm:$0xff]   ;;  %v1450_v44 = vld [vmem:[#allocation8 + $0x60] sm:$0xff]  }
  0x77   : > { %1233 = vmatprep.subr.bf16.mxu0 %v1629_v0  ;;  %1253 = vmatprep.subr.bf16.mxu1 %v1629_v0  ;;  %v1449_v43 = vld [vmem:[#allocation8 + $0x18] sm:$0xff]   ;;  %v1451_v45 = vld [vmem:[#allocation8 + $0x20] sm:$0xff]   ;;  %v1452_v46 = vld [vmem:[#allocation8 + $0x68] sm:$0xff]   ;;  %p1562_p2 = pnand %p1561_p12, %p1555_p3 }
  0x78   : > { %v1453_v47 = vld [vmem:[#allocation8 + $0x28] sm:$0xff]   ;;  %v1454_v48 = vld [vmem:[#allocation8 + $0x70] sm:$0xff]   ;;  %v1456_v50 = vld [vmem:[#allocation8 + $0x78] sm:$0xff]  }
  0x79   : > { %v1455_v49 = vld [vmem:[#allocation8 + $0x30] sm:$0xff]   ;;  %v1457_v51 = vld [vmem:[#allocation8 + $0x38] sm:$0xff]   ;;  %v1458_v10 = vld [vmem:[#allocation8 + $0x80] sm:$0xff]  }
  0x7a   : > { %1234 = vmatpush3.bf16.msra.mxu0 %v1424_v8  ;;  %1254 = vmatpush3.bf16.msra.mxu1 %v1425_v9  ;;  %v1131_v62 = vld [vmem:[%s2019_s3] ss:$0 sm:$0xff]  ;;  %v1463_v17 = vld [vmem:[#allocation8 + $0xa8] sm:$0xff]  }
  0x7b   : > { %1235 = vmatprep.subr.bf16.mxu0 %v1629_v0  ;;  %1255 = vmatprep.subr.bf16.mxu1 %v1629_v0  ;;  %v1460_v13 = vld [vmem:[#allocation8 + $0x90] sm:$0xff]  }
  0x7e   : > { %1236 = vmatpush3.bf16.msra.mxu0 %v1426_v11  ;;  %1256 = vmatpush3.bf16.msra.mxu1 %v1427_v12  ;;  %v1459_v12 = vld [vmem:[#allocation8 + $0x88] sm:$0xff]  }
  0x7f   : > { %1237 = vmatprep.subr.bf16.mxu0 %v1629_v0  ;;  %1257 = vmatprep.subr.bf16.mxu1 %v1629_v0 }
  0x82   : > { %1238 = vmatpush3.bf16.msra.mxu0 %v1428_v14  ;;  %1258 = vmatpush3.bf16.msra.mxu1 %v1429_v15  ;;  %v1461_v14 = vld [vmem:[#allocation8 + $0x98] sm:$0xff]   ;;  %v1462_v15 = vld [vmem:[#allocation8 + $0xa0] sm:$0xff]  }
  0x83   : > { %1239 = vmatprep.subr.bf16.mxu0 %v1629_v0  ;;  %1259 = vmatprep.subr.bf16.mxu1 %v1629_v0 }
  0x86   : > { %1240 = vmatpush3.bf16.msra.mxu0 %v1430_v18  ;;  %1260 = vmatpush3.bf16.msra.mxu1 %v1431_v19  ;;  %v1464_v18 = vld [vmem:[#allocation8 + $0xb0] sm:$0xff]   ;;  %v1465_v19 = vld [vmem:[#allocation8 + $0xb8] sm:$0xff]  }
  0x87   : > { %1241 = vmatprep.subr.bf16.mxu0 %v1629_v0  ;;  %1261 = vmatprep.subr.bf16.mxu1 %v1629_v0 }
  0x8a   : > { %1242 = vmatpush3.bf16.msra.mxu0 %v1432_v20  ;;  %1262 = vmatpush3.bf16.msra.mxu1 %v1433_v22 }
  0x8b   : > { %1267 = vmatprep.subr.bf16.mxu0 %v1629_v0  ;;  %1287 = vmatprep.subr.bf16.mxu1 %v1629_v0 }
  0x8d   : > { %1244 = vmatmul.mubr.msk.bf16.vlgmr.msra.gmra.mrb[0].mxu0 %vm1107_vm2, %v1108_v24  ;;  %1264 = vmatmul.mubr.bf16.vlgmr.msra.gmra.mrb[0].mxu1 %v316_v25 }
  0x8e   : > { %1268 = vmatpush3.bf16.msra.mxu0 %v1434_v23  ;;  %1283 = vmatprep.mubr.msk.bf16.mxu0 %vm1630_vm0, %v1629_v0 }
  0x8f   : > { %1269 = vmatprep.subr.bf16.mxu0 %v1629_v0  ;;  %1303 = vmatprep.mubr.msk.bf16.mxu1 %vm1630_vm0, %v1629_v0 }
  0x90   : > { %1288 = vmatpush3.bf16.msra.mxu1 %v1443_v37 }
  0x91   : > { %1289 = vmatprep.subr.bf16.mxu1 %v1629_v0 }
  0x92   : > { %1270 = vmatpush3.bf16.msra.mxu0 %v1435_v26 }
  0x93   : > { %1271 = vmatprep.subr.bf16.mxu0 %v1629_v0 }
  0x94   : > { %1290 = vmatpush3.bf16.msra.mxu1 %v1445_v39 }
  0x95   : > { %1291 = vmatprep.subr.bf16.mxu1 %v1629_v0 }
  0x96   : > { %1272 = vmatpush3.bf16.msra.mxu0 %v1436_v27 }
  0x97   : > { %1273 = vmatprep.subr.bf16.mxu0 %v1629_v0 }
  0x98   : > { %1292 = vmatpush3.bf16.msra.mxu1 %v1447_v41 }
  0x99   : > { %1293 = vmatprep.subr.bf16.mxu1 %v1629_v0 }
  0x9a   : > { %1274 = vmatpush3.bf16.msra.mxu0 %v1437_v28 }
  0x9b   : > { %1275 = vmatprep.subr.bf16.mxu0 %v1629_v0 }
  0x9c   : > { %1294 = vmatpush3.bf16.msra.mxu1 %v1449_v43 }
  0x9d   : > { %1295 = vmatprep.subr.bf16.mxu1 %v1629_v0 }
  0x9e   : > { %1276 = vmatpush3.bf16.msra.mxu0 %v1438_v29 }
  0x9f   : > { %1277 = vmatprep.subr.bf16.mxu0 %v1629_v0 }
  0xa0   : > { %1296 = vmatpush3.bf16.msra.mxu1 %v1451_v45 }
  0xa1   : > { %1297 = vmatprep.subr.bf16.mxu1 %v1629_v0 }
  0xa2   : > { %1278 = vmatpush3.bf16.msra.mxu0 %v1439_v30 }
  0xa3   : > { %1279 = vmatprep.subr.bf16.mxu0 %v1629_v0 }
  0xa4   : > { %1298 = vmatpush3.bf16.msra.mxu1 %v1453_v47 }
  0xa5   : > { %1299 = vmatprep.subr.bf16.mxu1 %v1629_v0 }
  0xa6   : > { %1280 = vmatpush3.bf16.msra.mxu0 %v1440_v31  ;;  %v1166_v31 = vld [vmem:[%s2020_s4] ss:$0 sm:$0xff] }
  0xa7   : > { %1281 = vmatprep.subr.bf16.mxu0 %v1629_v0 }
  0xa8   : > { %1300 = vmatpush3.bf16.msra.mxu1 %v1455_v49 }
  0xa9   : > { %1301 = vmatprep.subr.bf16.mxu1 %v1629_v0 }
  0xaa   : > { %1282 = vmatpush3.bf16.msra.mxu0 %v1441_v33 }
  0xab   : > { %1307 = vmatprep.subr.bf16.mxu0 %v1629_v0 }
  0xac   : > { %1302 = vmatpush3.bf16.msra.mxu1 %v1457_v51 }
  0xad   : > { %1284 = vmatmul.mubr.msk.bf16.vlgmr.msra.gmra.mrb[4].mxu0 %vm1128_vm4, %v1129_v35  ;;  %1327 = vmatprep.subr.bf16.mxu1 %v1629_v0 }
  0xae   : > { %1323 = vmatprep.mubr.msk.bf16.mxu0 %vm1630_vm0, %v1629_v0  ;;  %1308 = vmatpush3.bf16.msra.mxu0 %v1442_v36 }
  0xaf   : > { %1309 = vmatprep.subr.bf16.mxu0 %v1629_v0 }
  0xb2   : > { %1310 = vmatpush3.bf16.msra.mxu0 %v1444_v38 }
  0xb3   : > { %1311 = vmatprep.subr.bf16.mxu0 %v1629_v0 }
  0xb6   : > { %1312 = vmatpush3.bf16.msra.mxu0 %v1446_v40 }
  0xb7   : > { %1313 = vmatprep.subr.bf16.mxu0 %v1629_v0 }
  0xba   : > { %1314 = vmatpush3.bf16.msra.mxu0 %v1448_v42 }
  0xbb   : > { %1315 = vmatprep.subr.bf16.mxu0 %v1629_v0 }
  0xbe   : > { %1316 = vmatpush3.bf16.msra.mxu0 %v1450_v44 }
  0xbf   : > { %1317 = vmatprep.subr.bf16.mxu0 %v1629_v0 }
  0xc2   : > { %1318 = vmatpush3.bf16.msra.mxu0 %v1452_v46 }
  0xc3   : > { %1319 = vmatprep.subr.bf16.mxu0 %v1629_v0 }
  0xc6   : > { %1320 = vmatpush3.bf16.msra.mxu0 %v1454_v48 }
  0xc7   : > { %1321 = vmatprep.subr.bf16.mxu0 %v1629_v0 }
  0xca   : > { %1322 = vmatpush3.bf16.msra.mxu0 %v1456_v50 }
 0x160   : > { %v437_v52 = vpop.f32.mrb[0].mxu0  ;;  %v525_v54 = vpop.f32.mrb[0].mxu1 }
 0x161   : > { %v1245_v53 = vpop.f32.mrb[1].mxu0  ;;  %v526_v55 = vadd.f32 %v525_v54, %v437_v52  ;;  %v1265_v57 = vpop.f32.mrb[1].mxu1 }
 0x162   : > { %v440_v56 = vpop.f32.mrb[2].mxu0  ;;  %v528_v59 = vpop.f32.mrb[2].mxu1 }
 0x163   : > { %v1246_v58 = vpop.f32.mrb[3].mxu0  ;;  %v1266_v60 = vpop.f32.mrb[3].mxu1 }
 0x180   : > { %v631_v61 = vpop.f32.mrb[4].mxu0 }
 0x181   : > { %v637_v63 = vadd.f32 %v631_v61, %v526_v55  ;;  %v1285_v1 = vpop.f32.mrb[5].mxu0 }
 0x182   : > { %v634_v3 = vpop.f32.mrb[6].mxu0 }
 0x183   : > { %v645_v4 = vadd.f32 %v1131_v62, %v637_v63  ;;  %v1286_v5 = vpop.f32.mrb[7].mxu0 }
 0x185   : > { %vm646_vm5 = vcmp.gt.f32.partialorder %v645_v4, 0.0  ;;  %v648_v6 = vmul.f32 %v647_v2, %v645_v4 }
 0x187   : > { %v649_v7 = vsel %vm646_vm5, %v645_v4, %v648_v6 }
 0x188   : > { %v668_v8 = vrot.slane %v649_v7, 7  ;;  %v650_v9 = vpack.c.bf16 %v649_v7, %v649_v7  ;;  %v670_v20 = vrot.slane %v649_v7, 1 }
 0x18a   : > { %v1143_v11 = vpack.c.bf16 %v668_v8, %v668_v8  ;;  %1324 = vmatmul.mubr.bf16.vlgmr.msra.gmra.mrb[8].mxu0 %v650_v9  ;;  %v1164_v21 = vpack.c.bf16 %v670_v20, %v670_v20 }
 0x18c   : > { %1304 = vmatmul.mubr.msk.bf16.vlgmr.msra.gmra.mrb[4].mxu1 %vm1107_vm2, %v1143_v11 }
 0x18d   : > { %1328 = vmatpush3.bf16.msra.mxu1 %v1458_v10  ;;  %1343 = vmatprep.mubr.msk.bf16.mxu1 %vm1630_vm0, %v1629_v0 }
 0x18e   : > { %1329 = vmatprep.subr.bf16.mxu1 %v1629_v0 }
 0x191   : > { %1330 = vmatpush3.bf16.msra.mxu1 %v1459_v12 }
 0x192   : > { %1331 = vmatprep.subr.bf16.mxu1 %v1629_v0 }
 0x195   : > { %1332 = vmatpush3.bf16.msra.mxu1 %v1460_v13 }
 0x196   : > { %1333 = vmatprep.subr.bf16.mxu1 %v1629_v0 }
 0x199   : > { %1334 = vmatpush3.bf16.msra.mxu1 %v1461_v14 }
 0x19a   : > { %1335 = vmatprep.subr.bf16.mxu1 %v1629_v0 }
 0x19d   : > { %1336 = vmatpush3.bf16.msra.mxu1 %v1462_v15 }
 0x19e   : > { %1337 = vmatprep.subr.bf16.mxu1 %v1629_v0 }
 0x1a1   : > { %1338 = vmatpush3.bf16.msra.mxu1 %v1463_v17 }
 0x1a2   : > { %1339 = vmatprep.subr.bf16.mxu1 %v1629_v0 }
 0x1a5   : > { %1340 = vmatpush3.bf16.msra.mxu1 %v1464_v18 }
 0x1a6   : > { %1341 = vmatprep.subr.bf16.mxu1 %v1629_v0 }
 0x1a9   : > { %1342 = vmatpush3.bf16.msra.mxu1 %v1465_v19 }
 0x1ac   : > { %1344 = vmatmul.mubr.msk.bf16.vlgmr.msra.gmra.mrb[8].mxu1 %vm1128_vm4, %v1164_v21 }
 0x25d   : > { %v859_v22 = vpop.f32.mrb[8].mxu0 }
 0x25e   : > { %v1325_v23 = vpop.f32.mrb[9].mxu0 }
 0x25f   : > { %v771_v24 = vpop.f32.mrb[4].mxu1  ;;  %v862_v25 = vpop.f32.mrb[10].mxu0 }
 0x260   : > { %v860_v26 = vadd.f32 %v859_v22, %v771_v24  ;;  %v1305_v27 = vpop.f32.mrb[5].mxu1  ;;  %v1326_v28 = vpop.f32.mrb[11].mxu0 }
 0x261   : > { %v774_v29 = vpop.f32.mrb[6].mxu1 }
 0x262   : > { %v1306_v0 = vpop.f32.mrb[7].mxu1 }
 0x27f   : > { %v965_v30 = vpop.f32.mrb[8].mxu1 }
 0x280   : > { %v971_v32 = vadd.f32 %v965_v30, %v860_v26  ;;  %v1345_v33 = vpop.f32.mrb[9].mxu1 }
 0x281   : > { %v968_v34 = vpop.f32.mrb[10].mxu1 }
 0x282   : > { %v979_v35 = vadd.f32 %v1166_v31, %v971_v32  ;;  %v1346_v36 = vpop.f32.mrb[11].mxu1 }
 0x284   : > { %v980_v37 = vadd.f32 %v979_v35, %v1875_v16 }
 0x286   : > { %981 = vst [vmem:[%s296_s12] sm:$0xff] %v980_v37 }
 0x287   : > { %1565 = shalt.err (!%p1562_p2)
}
 0x288   : > { %s1566_s17 = scalar_lea.hbm %s1972_s21, 128  ;;  %s1570_s13 = scalar_lea.hbm %s2022_s6, 256 }
 0x289   : > { %p1567_p13 = scmp.ne.s32.totalorder %s1972_s21, %s1566_s17  ;;  %p1571_p4 = scmp.lt.u32.totalorder %s1972_s21, %s2022_s6 }
 0x28a   : > { %p1572_p5 = scmp.lt.u32.totalorder %s1570_s13, %s1566_s17  ;;  %p1574_p11 = scmp.lt.u32.totalorder %s1566_s17, %s1972_s21 }
 0x28b   : > { %p1568_p6 = pnand %p1567_p13, %p2040_p0 }
 0x28c   : > { %p1573_p8 = por %p1572_p5, %p1571_p4 }
 0x28d   : > { %p1569_p10 = pneg %p1568_p6 }
 0x28e   : > { %p1575_p1 = por %p1574_p11, %p1573_p8 }
 0x290   : > { %p1576_p3 = pnand %p1575_p1, %p1569_p10 }
 0x292   : > { %1579 = shalt.err (!%p1576_p3)
}
 0x293   : > { %1357 = dma.vmem_to_hbm [thread:$0]  (%p2040_p0), %s1974_s11, 128, %s1972_s21, %s983_s14  }
 0x294 PF: > { %s1008_s8 = sand.u32 1, %s1610_s23   ;;  %p2041_p7 = scmp.ne.s32.totalorder %s2027_s29, 0 }
 0x295   : > { %p2042_p9 = scmp.ge.s32.totalorder %s1622_s26, 2  ;;  %s1009_s12 = scalar_lea.sflag [#allocation5], %s1008_s8 }
 0x297   : > { %p1371_p12 = pnand %p2042_p9, %p2041_p7 }
 0x299   : > { %1605 = dma.done.wait (!%p1371_p12), %s1009_s12, 128  }
 0x29a   : > { %1607 = vsyncadd (!%p1371_p12), %s1009_s12, 4294967168  ;;  %p21_p2 = scmp.ge.s32.totalorder %s1780_s19, 4   ;;  %s2043_s23 = smov %s1614_s24 }
 0x29b   : > { %s2044_s24 = smov %s1618_s25  ;;  %s2045_s25 = smov %s1796_s7 }
 0x29c   : > { %s2046_s26 = smov %s1780_s19  ;;  %23 = sbr.rel (!%p21_p2) target bundleno = 8 (0x8), region = 101 }
 0x2a3   :  { %1014 = vsyncpa [#allocation4], 1 }
 0x2a4   :  { %1016 = vsyncpa [#allocation4 + $0x1], 1 }
 0x2a5   :  { %1017 = vsyncpa [#allocation7], 1 }
 0x2a6   :  { %1018 = vsyncpa [#allocation5], 1 }
 0x2a7   :  { %1020 = vsyncpa [#allocation5 + $0x1], 1 }

</bundles_post_ra>
